<compile_context>
chip_gen: v6e
topology: v6e:2x2x1
jax: 0.10.0
libtpu: 0.0.40
codegen_flags: <defaults>
</compile_context>

<pallas_src>
import jax
import jax.numpy as jnp
from jax import lax
from jax.experimental import pallas as pl
from jax.experimental.pallas import tpu as pltpu

BN_EPS = 1e-5
LEAKY_SLOPE = 0.01
LANE = 128
_VMEM_LIMIT = 48 * 1024 * 1024      # explicit scoped-VMEM cap (v7x-safe)
_VMEM_BUDGET = 24 * 1024 * 1024     # budget used when auto-deriving tile_m


def _round_up(a, b):
    return (a + b - 1) // b * b


def _auto_tile_m(k_total, c_pad):
    # Peak per-row VMEM: double-buffered bf16 patch tile + f32 conv tile (p1)
    # and f32 conv-in + f32 out tiles (p2). Conservative sum.
    per_row = 2 * (k_total * 2) + 4 * (c_pad * 4)
    tm = _VMEM_BUDGET // per_row
    tm = max(LANE, min(2048, tm))
    return (tm // LANE) * LANE


# ---------------------------------------------------------------------------
# Pass 1: conv tile (bf16 MXU matmul, f32 accumulate) + per-tile BN partials.
# ---------------------------------------------------------------------------
def _conv_stats_kernel(p_ref, w_ref, conv_ref, stats_ref):
    # p_ref: (TM, K) bf16    w_ref: (K, C_pad) bf16 (resident)
    # conv_ref: (TM, C_pad) f32    stats_ref: (8, C_pad) f32 partials
    conv = jnp.dot(p_ref[...], w_ref[...], preferred_element_type=jnp.float32)
    conv_ref[...] = conv
    s = jnp.sum(conv, axis=0, keepdims=True)            # (1, C_pad)
    ss = jnp.sum(conv * conv, axis=0, keepdims=True)    # (1, C_pad)
    rows = lax.broadcasted_iota(jnp.int32, stats_ref.shape, 0)
    stats_ref[...] = jnp.where(rows == 0, s, jnp.where(rows == 1, ss, 0.0))


# ---------------------------------------------------------------------------
# Pass 2: y = conv * scale + shift ; LeakyReLU(0.01). Lane-dense store.
# ---------------------------------------------------------------------------
def _bn_act_kernel(conv_ref, scale_ref, shift_ref, out_ref):
    y = conv_ref[...] * scale_ref[...] + shift_ref[...]
    out_ref[...] = jnp.where(y > 0.0, y, LEAKY_SLOPE * y).astype(out_ref.dtype)


def cnn_block_forward(x_nchw, weight, gamma, beta, *, stride=1, padding=1,
                      tile_m=None):
    N, C_in, H, W = x_nchw.shape
    C_out, C_in_w, KH, KW = weight.shape
    assert C_in == C_in_w

    H_out = (H + 2 * padding - KH) // stride + 1
    W_out = (W + 2 * padding - KW) // stride + 1
    M = N * H_out * W_out
    K_total = KH * KW * C_in
    c_pad = _round_up(C_out, LANE)

    if tile_m is None:
        tile_m = _auto_tile_m(K_total, c_pad)
    tile_m = max(LANE, (int(tile_m) // LANE) * LANE)
    m_pad = _round_up(M, tile_m)
    grid_m = m_pad // tile_m

    # --- glue: NCHW -> NHWC, spatial pad, im2col in bf16 -------------------
    x = jnp.transpose(x_nchw, (0, 2, 3, 1)).astype(jnp.bfloat16)
    x_sp = jnp.pad(x, ((0, 0), (padding, padding), (padding, padding), (0, 0)))
    cols = []
    for kh in range(KH):
        for kw in range(KW):
            cols.append(x_sp[:, kh:kh + stride * H_out:stride,
                                kw:kw + stride * W_out:stride, :])
    patches = jnp.stack(cols, axis=3).reshape(M, K_total)
    patches = jnp.pad(patches, ((0, m_pad - M), (0, 0)))   # zero rows -> no
                                                           # effect on BN sums
    # PyTorch weight (C_out, C_in, KH, KW) -> (KH*KW*C_in, C_out), pad lanes.
    w_mat = jnp.transpose(weight, (2, 3, 1, 0)).reshape(K_total, C_out)
    w_mat = jnp.pad(w_mat, ((0, 0), (0, c_pad - C_out))).astype(jnp.bfloat16)

    cparams = pltpu.CompilerParams(dimension_semantics=("parallel",),
                                   vmem_limit_bytes=_VMEM_LIMIT)

    conv_full, stats = pl.pallas_call(
        _conv_stats_kernel,
        grid=(grid_m,),
        in_specs=[
            pl.BlockSpec((tile_m, K_total), lambda i: (i, 0)),   # patch tiles
            pl.BlockSpec((K_total, c_pad), lambda i: (0, 0)),    # resident W
        ],
        out_specs=(
            pl.BlockSpec((tile_m, c_pad), lambda i: (i, 0)),     # conv tiles
            pl.BlockSpec((8, c_pad), lambda i: (i, 0)),          # partials
        ),
        out_shape=(
            jax.ShapeDtypeStruct((m_pad, c_pad), jnp.float32),
            jax.ShapeDtypeStruct((grid_m * 8, c_pad), jnp.float32),
        ),
        compiler_params=cparams,
    )(patches, w_mat)

    # --- exact batch statistics: reduce tiny per-tile partials in f32 ------
    stats = stats.reshape(grid_m, 8, c_pad)
    ch_sum = jnp.sum(stats[:, 0, :], axis=0)
    ch_sumsq = jnp.sum(stats[:, 1, :], axis=0)
    denom = float(M)                                  # pad rows contribute 0
    mean = ch_sum / denom
    var = jnp.maximum(ch_sumsq / denom - mean * mean, 0.0)   # biased variance
    gamma_p = jnp.pad(gamma.astype(jnp.float32), (0, c_pad - C_out),
                      constant_values=1.0)
    beta_p = jnp.pad(beta.astype(jnp.float32), (0, c_pad - C_out))
    scale = gamma_p * lax.rsqrt(var + BN_EPS)
    shift = beta_p - mean * scale
    scale2 = scale.reshape(1, c_pad)
    shift2 = shift.reshape(1, c_pad)

    out_full = pl.pallas_call(
        _bn_act_kernel,
        grid=(grid_m,),
        in_specs=[
            pl.BlockSpec((tile_m, c_pad), lambda i: (i, 0)),     # conv tiles
            pl.BlockSpec((1, c_pad), lambda i: (0, 0)),          # resident
            pl.BlockSpec((1, c_pad), lambda i: (0, 0)),          # resident
        ],
        out_specs=pl.BlockSpec((tile_m, c_pad), lambda i: (i, 0)),
        out_shape=jax.ShapeDtypeStruct((m_pad, c_pad), jnp.float32),
        compiler_params=cparams,
    )(conv_full, scale2, shift2)

    out = out_full[:M, :C_out].reshape(N, H_out, W_out, C_out)
    # NOTE: for chained CNNBlocks, return `out` (NHWC) and skip this transpose;
    # NCHW is kept only to match the PyTorch module's interface.
    return jnp.transpose(out, (0, 3, 1, 2))


def _reference(x, w, gamma, beta, stride, padding):
    conv = lax.conv_general_dilated(
        x, w, window_strides=(stride, stride),
        padding=[(padding, padding), (padding, padding)],
        dimension_numbers=("NCHW", "OIHW", "NCHW"))
    mean = conv.mean(axis=(0, 2, 3), keepdims=True)
    var = conv.var(axis=(0, 2, 3), keepdims=True)          # biased
    y = (conv - mean) * lax.rsqrt(var + BN_EPS)
    y = y * gamma.reshape(1, -1, 1, 1) + beta.reshape(1, -1, 1, 1)
    return jnp.where(y > 0, y, LEAKY_SLOPE * y)


if __name__ == "__main__":
    key = jax.random.PRNGKey(0)
    k_x, k_w = jax.random.split(key)

    N, C_in, H, W = 2, 4, 16, 16
    C_out, K = 8, 3

    x = jax.random.normal(k_x, (N, C_in, H, W), dtype=jnp.float32)
    # Conv2d weight (bias=False): (C_out, C_in, KH, KW)
    weight = jax.random.normal(k_w, (C_out, C_in, K, K), dtype=jnp.float32) * 0.1
    # BatchNorm2d affine params (PyTorch default init: gamma=1, beta=0).
    gamma = jnp.ones((C_out,), dtype=jnp.float32)
    beta = jnp.zeros((C_out,), dtype=jnp.float32)

    # tile_m=128 -> 4 row tiles at this size, exercising the multi-tile
    # two-pass BatchNorm path; leave tile_m=None for auto-sizing at real shapes.
    out = cnn_block_forward(x, weight, gamma, beta, stride=1, padding=1,
                            tile_m=128)
    jax.block_until_ready(out)
    assert out.shape == (N, C_out, H, W), out.shape

    ref = _reference(x, weight, gamma, beta, 1, 1)
    max_err = float(jnp.max(jnp.abs(out - ref)))
    assert max_err < 0.1, f"max abs err vs f32 reference: {max_err}"

    print("KERNEL_OK")
</pallas_src>

<mosaic_0001>
module attributes {stable_mosaic.version = 11 : i64} {
  func.func @_conv_stats_kernel(%arg0: i32, %arg1: memref<128x36xbf16, #tpu.memory_space<vmem>>, %arg2: memref<36x128xbf16, #tpu.memory_space<vmem>>, %arg3: memref<128x128xf32, #tpu.memory_space<vmem>>, %arg4: memref<8x128xf32, #tpu.memory_space<vmem>>) attributes {dimension_semantics = [#tpu.dimension_semantics<parallel>], iteration_bounds = array<i64: 4>, scalar_prefetch = 0 : i64, scratch_operands = 0 : i64, tpu.core_type = #tpu.core_type<tc>, window_params = [{transform_indices = @transform_0, window_bounds = array<i64: 128, 36>}, {pipeline_mode = #tpu.pipeline_mode<synchronous>, transform_indices = @transform_1, window_bounds = array<i64: 36, 128>}, {transform_indices = @transform_2, window_bounds = array<i64: 128, 128>}, {transform_indices = @transform_3, window_bounds = array<i64: 8, 128>}]} {
    %c0 = arith.constant 0 : index
    %c0_0 = arith.constant 0 : index
    %0 = vector.load %arg1[%c0, %c0_0] : memref<128x36xbf16, #tpu.memory_space<vmem>>, vector<128x36xbf16>
    %c0_1 = arith.constant 0 : index
    %c0_2 = arith.constant 0 : index
    %1 = vector.load %arg2[%c0_1, %c0_2] : memref<36x128xbf16, #tpu.memory_space<vmem>>, vector<36x128xbf16>
    %cst = arith.constant dense<0.000000e+00> : vector<128x128xf32>
    %2 = tpu.matmul %0, %1, %cst {dimension_numbers = #tpu.dot_dimension_numbers<[1], [0], [0], [1], [0, 0, 1, 1], [], []>} : vector<128x36xbf16>, vector<36x128xbf16>, vector<128x128xf32> -> vector<128x128xf32>
    %c0_3 = arith.constant 0 : index
    %c0_4 = arith.constant 0 : index
    %3 = vector.load %arg3[%c0_3, %c0_4] : memref<128x128xf32, #tpu.memory_space<vmem>>, vector<128x128xf32>
    tpu.vector_store %arg3[%c0_3, %c0_4], %2 {strides = array<i32>} : memref<128x128xf32, #tpu.memory_space<vmem>>, vector<128x128xf32>,
    %cst_5 = arith.constant dense<0.000000e+00> : vector<128xf32>
    %4 = vector.multi_reduction <add>, %2, %cst_5 [0] : vector<128x128xf32> to vector<128xf32>
    %5 = vector.shape_cast %4 : vector<128xf32> to vector<1x128xf32>
    %6 = arith.mulf %2, %2 : vector<128x128xf32>
    %cst_6 = arith.constant dense<0.000000e+00> : vector<128xf32>
    %7 = vector.multi_reduction <add>, %6, %cst_6 [0] : vector<128x128xf32> to vector<128xf32>
    %8 = vector.shape_cast %7 : vector<128xf32> to vector<1x128xf32>
    %9 = tpu.iota {dimensions = array<i32: 0>} : vector<8x128xi32>
    %c0_i32 = arith.constant 0 : i32
    %10 = vector.broadcast %c0_i32 : i32 to vector<8x128xi32>
    %11 = arith.cmpi eq, %9, %10 : vector<8x128xi32>
    %c1_i32 = arith.constant 1 : i32
    %12 = vector.broadcast %c1_i32 : i32 to vector<8x128xi32>
    %13 = arith.cmpi eq, %9, %12 : vector<8x128xi32>
    %cst_7 = arith.constant 0.000000e+00 : f32
    %14 = vector.shape_cast %8 : vector<1x128xf32> to vector<1x128xf32>
    %15 = vector.broadcast %14 : vector<1x128xf32> to vector<8x128xf32>
    %16 = vector.broadcast %cst_7 : f32 to vector<8x128xf32>
    %17 = arith.select %13, %15, %16 : vector<8x128xi1>, vector<8x128xf32>
    %18 = vector.shape_cast %5 : vector<1x128xf32> to vector<1x128xf32>
    %19 = vector.broadcast %18 : vector<1x128xf32> to vector<8x128xf32>
    %20 = arith.select %11, %19, %17 : vector<8x128xi1>, vector<8x128xf32>
    %c0_8 = arith.constant 0 : index
    %c0_9 = arith.constant 0 : index
    %21 = vector.load %arg4[%c0_8, %c0_9] : memref<8x128xf32, #tpu.memory_space<vmem>>, vector<8x128xf32>
    tpu.vector_store %arg4[%c0_8, %c0_9], %20 {strides = array<i32>} : memref<8x128xf32, #tpu.memory_space<vmem>>, vector<8x128xf32>,
    return
  }
  func.func @transform_0(%arg0: i32) -> (i32, i32) {
    %c0_i32 = arith.constant 0 : i32
    %c0_i32_0 = arith.constant 0 : i32
    return %arg0, %c0_i32 : i32, i32
  }
  func.func @transform_1(%arg0: i32) -> (i32, i32) {
    %c0_i32 = arith.constant 0 : i32
    %c0_i32_0 = arith.constant 0 : i32
    %c0_i32_1 = arith.constant 0 : i32
    return %c0_i32, %c0_i32_0 : i32, i32
  }
  func.func @transform_2(%arg0: i32) -> (i32, i32) {
    %c0_i32 = arith.constant 0 : i32
    %c0_i32_0 = arith.constant 0 : i32
    return %arg0, %c0_i32 : i32, i32
  }
  func.func @transform_3(%arg0: i32) -> (i32, i32) {
    %c0_i32 = arith.constant 0 : i32
    %c0_i32_0 = arith.constant 0 : i32
    return %arg0, %c0_i32 : i32, i32
  }
}

</mosaic_0001>

<bundles_post_ra>
// kernel: tpu_custom_call.1
= control target key start
LH: loop header
LB: loop body
LE: loop exit
PB: predicated region body
PF: predicated region fallthrough
CT: control target
= control target key end

     0   :  { %9 = vsyncpa [#allocation3], 0  ;;  %s1042_s0 = inlined_call_operand.vmem [shape: bf16[512,36], index: 0, kind: input, shape index: {}]   ;;  %s1043_s1 = inlined_call_operand.vmem [shape: bf16[36,128], index: 1, kind: input, shape index: {}]   ;;  %s1044_s2 = inlined_call_operand.hbm [shape: f32[512,128], index: 2, kind: output, shape index: {0}]   ;;  %s1045_s3 = inlined_call_operand.hbm [shape: f32[32,128], index: 3, kind: output, shape index: {1}]  }
   0x1   :  { %11 = vsyncpa [#allocation3 + $0x1], 0 }
   0x2   :  { %12 = vsyncpa [#allocation5], 0 }
   0x3   :  { %14 = vsyncpa [#allocation5 + $0x1], 0  ;;  %s842_s12 = smov 0   ;;  %s844_s13 = smov 0  }
   0x4   :  { %s846_s14 = smov 0   ;;  %s848_s15 = smov 0  }
   0x5 LB: > { %s863_s16 = sadd.s32 4294967295, %s816_s15   ;;  %s593_s17 = sadd.s32 4294967294, %s816_s15   ;;  %s816_s15 = sphi %s848_s15, %s1051_s15   ;;  %s812_s14 = sphi %s846_s14, %s1050_s14   ;;  %s808_s13 = sphi %s844_s13, %s1049_s13   ;;  %s804_s12 = sphi %s842_s12, %s1048_s12  }
   0x6   : > { %s867_s18 = sadd.s32 1, %s816_s15   ;;  %s74_s19 = sadd.s32 1, %s812_s14 }
   0x7   : > { %s71_s20 = ssub.s32 %s816_s15, %s867_s18  ;;  %p84_p0 = scmp.ne.s32.totalorder %s812_s14, %s808_s13 }
   0x8   : > { %p72_p1 = scmp.eq.s32.totalorder %s71_s20, 0  ;;  %p85_p2 = scmp.eq.s32.totalorder %s863_s16, 3 }
   0x9   : > { %p90_p3 = scmp.ne.s32.totalorder %s808_s13, %s804_s12  ;;  %p91_p4 = scmp.eq.s32.totalorder %s593_s17, 3 }
   0xa   : > { %s878_s21 = scalar_select %p72_p1, %s812_s14, %s74_s19  }
   0xb   : > { %p880_p5 = por %p85_p2, %p84_p0  ;;  %p884_p6 = por %p91_p4, %p90_p3 }
   0xc   : > { %p596_p7 = scmp.ge.s32.totalorder %s816_s15, 1  ;;  %p147_p8 = scmp.lt.s32.totalorder %s816_s15, 5 }
   0xe   : > { %p148_p9 = pnand %p596_p7, %p147_p8 }
   0xf   : > { %s599_s28 = sshll.u32 (!%p148_p9), %s863_s16, 4  ;;  %s912_s8 = sand.u32 (!%p148_p9), 1, %s808_s13  }
  0x10   : > { %151 = sbr.rel (%p148_p9) target bundleno = 302 (0x12e), region = 28  ;;  %p177_p10 = scmp.lt.s32.totalorder (!%p148_p9), %s599_s28, 63 }
  0x11   : > { %s597_s9 = sshll.u32 (!%p148_p9), %s912_s8, 7  ;;  %s627_s11 = sshll.u32 (!%p148_p9), %s863_s16, 11 }
  0x12   : > { %s915_s10 = scalar_lea.vmem (!%p148_p9), [#allocation2], %s597_s9  ;;  %s952_s24 = scalar_lea.hbm (!%p148_p9), %s1044_s2, %s627_s11 }
  0x13   : > { %s486_s17 = sshll.u32 (!%p148_p9), %s915_s10, 4  ;;  %s468_s25 = scalar_lea.sflag (!%p148_p9), [#allocation3], %s912_s8  ;;  %s954_s17 = int_to_ptr.vmem [resolvable:$true] %s486_s17 }
  0x14   : > { %s726_s26 = scalar_lea.vmem (!%p148_p9), %s954_s17, 2048  ;;  %s818_s27 = smov (!%p148_p9), [#allocation2]  }
  0x15   : > { %v715_v0 = vld [vmem:[%s1043_s1 + $0x10] ss:$0 sps:$4 sm:$0x33]   ;;  %vm285_vm0 = vcmask 1041408   ;;  %v716_v1 = vld [vmem:[%s1043_s1 + $0x8] sm:$0xff]   ;;  %v717_v3 = vld [vmem:[%s1043_s1] sm:$0xff]   ;;  %p727_p11 = scmp.ne.s32.totalorder %s954_s17, %s726_s26 }
  0x16   : > { %667 = vmatprep.subr.msk.bf16.mxu0 %vm285_vm0, %v715_v0  ;;  %v287_v2 = vsel %vm285_vm0, %v715_v0, 0  ;;  %668 = vmatprep.subr.msk.bf16.mxu1 %vm285_vm0, %v715_v0  ;;  %s1053_s28 = smov (!%p177_p10, %s599_s28), 63  ;;  %vm260_vm1 = vcmask 293888  }
  0x17   : > { %640 = vmatpush3.bf16.msra.mxu0 %v287_v2  ;;  %664 = vmatpush3.bf16.msra.mxu1 %v287_v2  ;;  %s600_s4 = sshll.u32 %s1053_s28, 2  ;;  %p728_p12 = pnand %p727_p11, %p880_p5 }
  0x18   : > { %641 = vmatprep.subr.bf16.mxu0 %v716_v1  ;;  %662 = vmatprep.subr.bf16.mxu1 %v716_v1  ;;  %s180_s7 = scalar_lea.vmem %s1042_s0, %s600_s4  ;;  %s730_s28 = sshll.u32 %s818_s27, 4  ;;  %s731_s28 = int_to_ptr.vmem [resolvable:$false] %s730_s28 }
  0x19   : > { %v718_v4 = vld [vmem:[%s180_s7] sm:$0xff]   ;;  %v719_v5 = vld [vmem:[%s180_s7 + $0x8] sm:$0xff]   ;;  %v720_v6 = vld [vmem:[%s180_s7 + $0x10] sm:$0xff]   ;;  %p729_p13 = pneg %p728_p12  ;;  %s732_s29 = scalar_lea.vmem %s731_s28, 4096 }
  0x1a   : > { %645 = vmatprep.mubr.msk.bf16.mxu0 %vm260_vm1, %v718_v4  ;;  %v722_v7 = vld [vmem:[%s180_s7 + $0x20] sm:$0xff]   ;;  %v723_v8 = vld [vmem:[%s180_s7 + $0x28] sm:$0xff]   ;;  %v724_v9 = vld [vmem:[%s180_s7 + $0x30] sm:$0xff]   ;;  %p733_p0 = scmp.lt.s32.totalorder %s954_s17, %s731_s28  ;;  %p734_p1 = scmp.lt.s32.totalorder %s732_s29, %s726_s26 }
  0x1b   : > { %642 = vmatpush3.bf16.msra.mxu0 %v716_v1  ;;  %665 = vmatpush3.bf16.msra.mxu1 %v716_v1  ;;  %v721_v10 = vld [vmem:[%s180_s7 + $0x18] sm:$0xff]  }
  0x1c   : > { %643 = vmatprep.subr.bf16.mxu0 %v717_v3  ;;  %663 = vmatprep.subr.bf16.mxu1 %v717_v3  ;;  %v725_v11 = vld [vmem:[%s180_s7 + $0x38] sm:$0xff]   ;;  %p735_p2 = por %p734_p1, %p733_p0 }
  0x1d   : > { %653 = vmatprep.mubr.msk.bf16.mxu1 %vm260_vm1, %v722_v7 }
  0x1e   : > { %p736_p3 = pnand %p735_p2, %p729_p13 }
  0x1f   : > { %644 = vmatpush3.bf16.msra.mxu0 %v717_v3  ;;  %666 = vmatpush3.bf16.msra.mxu1 %v717_v3 }
  0x22   : > { %646 = vmatmul.mubr.msk.bf16.vlgmr.msra.gmra.mxu0 %vm260_vm1, %v719_v5  ;;  %654 = vmatmul.mubr.msk.bf16.vlgmr.msra.gmra.mxu1 %vm260_vm1, %v723_v8 }
  0x23   : > { %649 = vmatprep.mubr.msk.bf16.mxu0 %vm260_vm1, %v720_v6  ;;  %657 = vmatprep.mubr.msk.bf16.mxu1 %vm260_vm1, %v724_v9 }
  0x2a   : > { %650 = vmatmul.mubr.msk.bf16.gmra.mxu0 %vm260_vm1, %v721_v10  ;;  %658 = vmatmul.mubr.msk.bf16.gmra.mxu1 %vm260_vm1, %v725_v11 }
  0xe2   : > { %v647_v12 = vpop.f32.mrf.mxu0  ;;  %v918_v14 = vpop.f32.mrf.mxu1 }
  0xe3   : > { %388 = vst [vmem:[%s915_s10 + $0x10] sm:$0xff] %v647_v12  ;;  %396 = vst [vmem:[%s915_s10 + $0x50] sm:$0xff] %v918_v14  ;;  %v425_v24 = vmul.f32 %v647_v12, %v647_v12 }
  0xe4   : > { %v323_v13 = vpop.f32.mrf.mxu0  ;;  %v923_v16 = vpop.f32.mrf.mxu1 }
  0xe5   : > { %386 = vst [vmem:[%s915_s10] sm:$0xff] %v323_v13  ;;  %394 = vst [vmem:[%s915_s10 + $0x40] sm:$0xff] %v923_v16  ;;  %v423_v19 = vmul.f32 %v323_v13, %v323_v13 }
  0xe6   : > { %v648_v15 = vpop.f32.mrf.mxu0  ;;  %v928_v18 = vpop.f32.mrf.mxu1 }
  0xe7   : > { %389 = vst [vmem:[%s915_s10 + $0x18] sm:$0xff] %v648_v15  ;;  %397 = vst [vmem:[%s915_s10 + $0x58] sm:$0xff] %v928_v18  ;;  %v426_v29 = vmul.f32 %v648_v15, %v648_v15 }
  0xe8   : > { %v326_v17 = vpop.f32.mrf.mxu0  ;;  %v933_v23 = vpop.f32.mrf.mxu1 }
  0xe9   : > { %387 = vst [vmem:[%s915_s10 + $0x8] sm:$0xff] %v326_v17  ;;  %v402_v20 = vadd.f32 %v326_v17, %v323_v13  ;;  %v424_v21 = vmul.f32 %v326_v17, %v326_v17  ;;  %395 = vst [vmem:[%s915_s10 + $0x48] sm:$0xff] %v933_v23 }
  0xea   : > { %v651_v22 = vpop.f32.mrf.mxu0  ;;  %v938_v28 = vpop.f32.mrf.mxu1 }
  0xeb   : > { %v403_v25 = vadd.f32 %v647_v12, %v402_v20  ;;  %v439_v26 = vadd.f32 %v424_v21, %v423_v19  ;;  %392 = vst [vmem:[%s915_s10 + $0x30] sm:$0xff] %v651_v22  ;;  %400 = vst [vmem:[%s915_s10 + $0x70] sm:$0xff] %v938_v28  ;;  %v429_v43 = vmul.f32 %v651_v22, %v651_v22 }
  0xec   : > { %v339_v27 = vpop.f32.mrf.mxu0  ;;  %v371_v33 = vpop.f32.mrf.mxu1 }
  0xed   : > { %v440_v30 = vadd.f32 %v439_v26, %v425_v24  ;;  %390 = vst [vmem:[%s915_s10 + $0x20] sm:$0xff] %v339_v27  ;;  %v404_v31 = vadd.f32 %v648_v15, %v403_v25  ;;  %v427_v35 = vmul.f32 %v339_v27, %v339_v27  ;;  %398 = vst [vmem:[%s915_s10 + $0x60] sm:$0xff] %v371_v33 }
  0xee   : > { %v652_v32 = vpop.f32.mrf.mxu0  ;;  %v947_v38 = vpop.f32.mrf.mxu1 }
  0xef   : > { %v405_v34 = vadd.f32 %v404_v31, %v339_v27  ;;  %v441_v36 = vadd.f32 %v440_v30, %v426_v29  ;;  %393 = vst [vmem:[%s915_s10 + $0x38] sm:$0xff] %v652_v32  ;;  %401 = vst [vmem:[%s915_s10 + $0x78] sm:$0xff] %v947_v38 }
  0xf0   : > { %v342_v37 = vpop.f32.mrf.mxu0  ;;  %v374_v42 = vpop.f32.mrf.mxu1 }
  0xf1   : > { %v442_v39 = vadd.f32 %v441_v36, %v427_v35  ;;  %391 = vst [vmem:[%s915_s10 + $0x28] sm:$0xff] %v342_v37  ;;  %v406_v40 = vadd.f32 %v405_v34, %v342_v37  ;;  %v428_v41 = vmul.f32 %v342_v37, %v342_v37  ;;  %399 = vst [vmem:[%s915_s10 + $0x68] sm:$0xff] %v374_v42 }
  0xf3   : > { %v407_v44 = vadd.f32 %v651_v22, %v406_v40  ;;  %v443_v45 = vadd.f32 %v442_v39, %v428_v41 }
  0xf4   : > { %739 = shalt.err (!%p736_p3)
}
  0xf5   : > { %s740_s30 = scalar_lea.hbm %s952_s24, 2048  ;;  %s744_s6 = scalar_lea.hbm %s1044_s2, 8192 }
  0xf6   : > { %p741_p4 = scmp.ne.s32.totalorder %s952_s24, %s740_s30  ;;  %p745_p9 = scmp.lt.s32.totalorder %s952_s24, %s1044_s2 }
  0xf7   : > { %p746_p10 = scmp.lt.s32.totalorder %s744_s6, %s740_s30 }
  0xf8   : > { %p742_p7 = pnand %p741_p4, %p880_p5 }
  0xf9   : > { %p747_p11 = por %p746_p10, %p745_p9 }
  0xfa   : > { %p743_p8 = pneg %p742_p7 }
  0xfc   : > { %p748_p12 = pnand %p747_p11, %p743_p8 }
  0xfe   : > { %751 = shalt.err (!%p748_p12)
}
  0xff   : > { %s819_s10 = smov 128   ;;  %s820_s11 = smov 8   ;;  %v430_v46 = vmul.f32 %v652_v32, %v652_v32  ;;  %v408_v47 = vadd.f32 %v652_v32, %v407_v44  ;;  %v444_v48 = vadd.f32 %v443_v45, %v429_v43  ;;  %v431_v49 = vmul.f32 %v923_v16, %v923_v16 }
 0x100   : > { %669 = dma.vmem_to_hbm [thread:$0]  (%p880_p5), %s954_s17, 2048, %s952_s24, %s468_s25, %s819_s10, %s819_s10, %s820_s11   ;;  %v432_v53 = vmul.f32 %v933_v23, %v933_v23  ;;  %v433_v55 = vmul.f32 %v918_v14, %v918_v14  ;;  %v434_v58 = vmul.f32 %v928_v18, %v928_v18  ;;  %v435_v62 = vmul.f32 %v371_v33, %v371_v33 }
 0x101   : > { %v445_v50 = vadd.f32 %v444_v48, %v430_v46  ;;  %v409_v51 = vadd.f32 %v408_v47, %v923_v16  ;;  %v436_v2 = vmul.f32 %v374_v42, %v374_v42  ;;  %v437_v3 = vmul.f32 %v938_v28, %v938_v28  ;;  %s598_s17 = sshll.u32 %s912_s8, 3  ;;  %s624_s19 = sshll.u32 %s863_s16, 7 }
 0x102   : > { %v438_v6 = vmul.f32 %v947_v38, %v947_v38  ;;  %v460_v13 = vlaneseq  ;;  %s175_s20 = scalar_lea.vmem [#allocation4], %s598_s17  ;;  %s1006_s27 = scalar_lea.hbm %s1045_s3, %s624_s19 }
 0x103   : > { %v410_v52 = vadd.f32 %v409_v51, %v933_v23  ;;  %v446_v54 = vadd.f32 %v445_v50, %v431_v49  ;;  %s502_s24 = sshll.u32 %s175_s20, 4  ;;  %s473_s28 = scalar_lea.sflag [#allocation5], %s912_s8  ;;  %s503_s24 = int_to_ptr.vmem [resolvable:$true] %s502_s24 }
 0x104   : > { %s752_s29 = scalar_lea.vmem %s503_s24, 128  ;;  %s821_s16 = smov [#allocation4]  }
 0x105   : > { %v411_v56 = vadd.f32 %v918_v14, %v410_v52  ;;  %v447_v57 = vadd.f32 %v446_v54, %v432_v53  ;;  %p753_p13 = scmp.ne.s32.totalorder %s503_s24, %s752_s29  ;;  %s756_s30 = sshll.u32 %s821_s16, 4  ;;  %s757_s30 = int_to_ptr.vmem [resolvable:$false] %s756_s30 }
 0x106   : > { %s758_s4 = scalar_lea.vmem %s757_s30, 256  ;;  %p759_p2 = scmp.lt.s32.totalorder %s503_s24, %s757_s30 }
 0x107   : > { %v448_v59 = vadd.f32 %v447_v57, %v433_v55  ;;  %v412_v60 = vadd.f32 %v928_v18, %v411_v56  ;;  %v461_v18 = vshrl.u32 %v460_v13, 7  ;;  %p754_p0 = pnand %p753_p13, %p880_p5  ;;  %p760_p3 = scmp.lt.s32.totalorder %s758_s4, %s752_s29 }
 0x109   : > { %v413_v61 = vadd.f32 %v412_v60, %v371_v33  ;;  %v449_v63 = vadd.f32 %v448_v59, %v434_v58  ;;  %vm463_vm2 = vcmp.eq.s32.totalorder %v461_v18, 1  ;;  %vm462_vm3 = vcmp.eq.s32.totalorder %v461_v18, 0  ;;  %p755_p1 = pneg %p754_p0  ;;  %p761_p4 = por %p760_p3, %p759_p2 }
 0x10b   : > { %v450_v0 = vadd.f32 %v449_v63, %v435_v62  ;;  %v414_v1 = vadd.f32 %v413_v61, %v374_v42  ;;  %p762_p7 = pnand %p761_p4, %p755_p1 }
 0x10d   : > { %v415_v4 = vadd.f32 %v938_v28, %v414_v1  ;;  %v451_v5 = vadd.f32 %v450_v0, %v436_v2 }
 0x10f   : > { %v416_v7 = vadd.f32 %v947_v38, %v415_v4  ;;  %v452_v8 = vadd.f32 %v451_v5, %v437_v3 }
 0x111   : > { %v417_v9 = vrot.slane %v416_v7, 4  ;;  %v453_v10 = vadd.f32 %v452_v8, %v438_v6 }
 0x113   : > { %v418_v11 = vadd.f32 %v417_v9, %v416_v7  ;;  %v454_v12 = vrot.slane %v453_v10, 4 }
 0x115   : > { %v419_v14 = vrot.slane %v418_v11, 2  ;;  %v455_v15 = vadd.f32 %v454_v12, %v453_v10 }
 0x117   : > { %v420_v16 = vadd.f32 %v419_v14, %v418_v11  ;;  %v456_v17 = vrot.slane %v455_v15, 2 }
 0x119   : > { %v457_v19 = vadd.f32 %v456_v17, %v455_v15  ;;  %v421_v20 = vrot.slane %v420_v16, 1 }
 0x11b   : > { %v458_v21 = vrot.slane %v457_v19, 1  ;;  %v422_v23 = vadd.f32 %v421_v20, %v420_v16 }
 0x11d   : > { %v459_v22 = vadd.f32 %v458_v21, %v457_v19 }
 0x11f   : > { %v464_v24 = vsel %vm463_vm2, %v459_v22, 0.0 }
 0x120   : > { %v465_v25 = vsel %vm462_vm3, %v422_v23, %v464_v24 }
 0x121   : > { %466 = vst [vmem:[%s175_s20] sm:$0xff] %v465_v25 }
 0x122   : > { %765 = shalt.err (!%p762_p7)
}
 0x123   : > { %s766_s5 = scalar_lea.hbm %s1006_s27, 128  ;;  %s770_s7 = scalar_lea.hbm %s1045_s3, 512 }
 0x124   : > { %p767_p8 = scmp.ne.s32.totalorder %s1006_s27, %s766_s5  ;;  %p771_p11 = scmp.lt.s32.totalorder %s1006_s27, %s1045_s3 }
 0x125   : > { %p772_p12 = scmp.lt.s32.totalorder %s770_s7, %s766_s5 }
 0x126   : > { %p768_p9 = pnand %p767_p8, %p880_p5 }
 0x127   : > { %p773_p13 = por %p772_p12, %p771_p11 }
 0x128   : > { %p769_p10 = pneg %p768_p9 }
 0x12a   : > { %p774_p0 = pnand %p773_p13, %p769_p10 }
 0x12c   : > { %777 = shalt.err (!%p774_p0)
}
 0x12d   : > { %670 = dma.vmem_to_hbm [thread:$0]  (%p880_p5), %s503_s24, 128, %s1006_s27, %s473_s28  }
 0x12e PF: > { %p680_p1 = scmp.ge.s32.totalorder %s816_s15, 2  ;;  %s514_s11 = sand.u32 1, %s804_s12  }
 0x12f   : > { %s515_s17 = scalar_lea.sflag [#allocation3], %s514_s11 }
 0x130   : > { %p674_p2 = pnand %p680_p1, %p884_p6 }
 0x132   : > { %p675_p3 = pneg %p674_p2 }
 0x134   : > { %795 = dma.done.wait (%p675_p3), %s515_s17, 2048  }
 0x135   : > { %797 = vsyncadd (%p675_p3), %s515_s17, 4294965248  ;;  %s524_s19 = scalar_lea.sflag [#allocation5], %s514_s11 }
 0x136   : > { %799 = dma.done.wait (%p675_p3), %s524_s19, 128  }
 0x137   : > { %801 = vsyncadd (%p675_p3), %s524_s19, 4294967168  ;;  %p17_p5 = scmp.ge.s32.totalorder %s867_s18, 6   ;;  %s1048_s12 = smov %s808_s13 }
 0x138   : > { %s1049_s13 = smov %s812_s14  ;;  %s1050_s14 = smov %s878_s21 }
 0x139   : > { %s1051_s15 = smov %s867_s18  ;;  %19 = sbr.rel (!%p17_p5) target bundleno = 5 (0x5), region = 80 }
 0x13e   :  { %529 = vsyncpa [#allocation3], 1 }
 0x13f   :  { %531 = vsyncpa [#allocation3 + $0x1], 1 }
 0x140   :  { %532 = vsyncpa [#allocation5], 1 }
 0x141   :  { %534 = vsyncpa [#allocation5 + $0x1], 1 }

</bundles_post_ra>
